<compile_context>
chip_gen: v5e
topology: v5e:2x2
jax: 0.10.0
libtpu: 0.0.40
codegen_flags: <defaults>
</compile_context>

<pallas_src>
import functools

import jax
import jax.numpy as jnp
from jax.experimental import pallas as pl
from jax.experimental.pallas import tpu as pltpu


def _round_up(x, m):
    return (x + m - 1) // m * m


def _ffn_kernel(x_ref, w1_ref, b1_ref, w2_ref, b2_ref, o_ref, acc_ref):
    # x_ref:  (tm, D_in_pad)        row tile (resident across the hidden axis)
    # w1_ref: (D_in_pad, th)        hidden-chunk of linear1 weight
    # b1_ref: (1, th)               hidden-chunk of linear1 bias (f32)
    # w2_ref: (th, D_out_pad)       hidden-chunk of linear2 weight
    # b2_ref: (1, D_out_pad)        linear2 bias (f32, grid-constant)
    # o_ref:  (tm, D_out_pad)       output tile (resident across the hidden axis)
    # acc_ref:(tm, D_out_pad) f32   accumulator scratch
    k = pl.program_id(1)

    @pl.when(k == 0)
    def _init():
        # Fuse the linear2 bias into the accumulator initialization.
        acc_ref[...] = jnp.broadcast_to(
            b2_ref[...].astype(jnp.float32), acc_ref.shape
        )

    h = jnp.dot(x_ref[...], w1_ref[...], preferred_element_type=jnp.float32)
    h = jnp.maximum(h + b1_ref[...], 0.0)  # linear1 bias + ReLU
    # dropout with p=0 / eval mode is identity (see TODO at top of file)
    acc_ref[...] += jnp.dot(
        h.astype(w2_ref.dtype), w2_ref[...], preferred_element_type=jnp.float32
    )

    @pl.when(k == pl.num_programs(1) - 1)
    def _finalize():
        o_ref[...] = acc_ref[...].astype(o_ref.dtype)


@functools.partial(
    jax.jit,
    static_argnames=("tm", "th", "compute_dtype", "dropout_rate", "training"),
)
def feed_forward_network(
    x, w1, b1, w2, b2, *, tm=256, th=512, compute_dtype=None,
    dropout_rate=0.0, training=False,
):
    """x: [B, S, input_size]; w1: [input_size, hidden]; w2: [hidden, output].

    compute_dtype: optional dtype (e.g. jnp.bfloat16) for the MXU operands;
    accumulation and biases stay f32.
    """
    if training and dropout_rate > 0.0:
        # TODO(synk): implement training-mode dropout with pltpu.prng_* masking.
        raise NotImplementedError("training-mode dropout (p>0) is not implemented")

    out_dtype = x.dtype
    B, S, D_in = x.shape
    D_hid = w1.shape[1]
    D_out = w2.shape[1]
    M = B * S

    if compute_dtype is not None:
        x = x.astype(compute_dtype)
        w1 = w1.astype(compute_dtype)
        w2 = w2.astype(compute_dtype)

    # --- tiling / padding ---------------------------------------------------
    # Row tile: as large as requested, but never larger than the (8-aligned) problem.
    tm_eff = min(tm, _round_up(M, 8))
    M_pad = _round_up(M, tm_eff)
    # Hidden chunk: lane-dense multiple of 128, streamed as the reduction axis.
    th_eff = min(th, _round_up(D_hid, 128))
    D_hid_pad = _round_up(D_hid, th_eff)
    # Feature dims padded to 128 so every load/store is lane-dense.
    D_in_pad = _round_up(D_in, 128)
    D_out_pad = _round_up(D_out, 128)

    x2d = jnp.pad(x.reshape(M, D_in), ((0, M_pad - M), (0, D_in_pad - D_in)))
    w1p = jnp.pad(w1, ((0, D_in_pad - D_in), (0, D_hid_pad - D_hid)))
    b1p = jnp.pad(
        b1.astype(jnp.float32).reshape(1, D_hid), ((0, 0), (0, D_hid_pad - D_hid))
    )
    w2p = jnp.pad(w2, ((0, D_hid_pad - D_hid), (0, D_out_pad - D_out)))
    b2p = jnp.pad(
        b2.astype(jnp.float32).reshape(1, D_out), ((0, 0), (0, D_out_pad - D_out))
    )

    grid = (M_pad // tm_eff, D_hid_pad // th_eff)

    out = pl.pallas_call(
        _ffn_kernel,
        out_shape=jax.ShapeDtypeStruct((M_pad, D_out_pad), out_dtype),
        grid_spec=pltpu.PrefetchScalarGridSpec(
            num_scalar_prefetch=0,
            grid=grid,
            in_specs=[
                pl.BlockSpec((tm_eff, D_in_pad), lambda i, k: (i, 0)),     # x rows
                pl.BlockSpec((D_in_pad, th_eff), lambda i, k: (0, k)),     # w1 chunk
                pl.BlockSpec((1, th_eff), lambda i, k: (0, k)),            # b1 chunk
                pl.BlockSpec((th_eff, D_out_pad), lambda i, k: (k, 0)),    # w2 chunk
                pl.BlockSpec((1, D_out_pad), lambda i, k: (0, 0)),         # b2 (constant)
            ],
            out_specs=pl.BlockSpec((tm_eff, D_out_pad), lambda i, k: (i, 0)),
            scratch_shapes=[pltpu.VMEM((tm_eff, D_out_pad), jnp.float32)],
        ),
        compiler_params=pltpu.CompilerParams(
            dimension_semantics=("parallel", "arbitrary"),
            vmem_limit_bytes=64 * 1024 * 1024,
        ),
    )(x2d, w1p, b1p, w2p, b2p)

    return out[:M, :D_out].reshape(B, S, D_out)


def _torch_linear_init(key, fan_in, fan_out):
    """Mimic nn.Linear default init: U(-1/sqrt(fan_in), 1/sqrt(fan_in))."""
    kw, kb = jax.random.split(key)
    bound = 1.0 / (fan_in ** 0.5)
    # torch weight is (out, in); we keep it (in, out) for the kernel (same math, x @ W.T).
    w = jax.random.uniform(kw, (fan_in, fan_out), jnp.float32, -bound, bound)
    b = jax.random.uniform(kb, (fan_out,), jnp.float32, -bound, bound)
    return w, b


if __name__ == "__main__":
    batch, seq = 2, 8
    input_size, hidden_size, output_size = 32, 64, 32

    key = jax.random.PRNGKey(0)
    kx, k1, k2 = jax.random.split(key, 3)

    x = jax.random.normal(kx, (batch, seq, input_size), jnp.float32)
    w1, b1 = _torch_linear_init(k1, input_size, hidden_size)
    w2, b2 = _torch_linear_init(k2, hidden_size, output_size)

    # Reference in plain JAX (eval-mode dropout == identity).
    ref = jnp.maximum(x @ w1 + b1, 0.0) @ w2 + b2

    # f32 path (matches the PyTorch reference tightly).
    y = feed_forward_network(x, w1, b1, w2, b2)
    y = jax.block_until_ready(y)
    assert y.shape == (batch, seq, output_size)
    assert jnp.allclose(y, ref, atol=1e-5, rtol=1e-5)

    # bf16 MXU path (f32 accumulation) — looser tolerance for bf16 operands.
    y_bf16 = feed_forward_network(x, w1, b1, w2, b2, compute_dtype=jnp.bfloat16)
    y_bf16 = jax.block_until_ready(y_bf16)
    assert jnp.allclose(y_bf16, ref, atol=3e-2, rtol=3e-2)

    print("KERNEL_OK")
</pallas_src>

<mosaic_0001>
module attributes {stable_mosaic.version = 11 : i64} {
  func.func @_ffn_kernel(%arg0: i32, %arg1: i32, %arg2: memref<16x128xf32, #tpu.memory_space<vmem>>, %arg3: memref<128x128xf32, #tpu.memory_space<vmem>>, %arg4: memref<1x128xf32, #tpu.memory_space<vmem>>, %arg5: memref<128x128xf32, #tpu.memory_space<vmem>>, %arg6: memref<1x128xf32, #tpu.memory_space<vmem>>, %arg7: memref<16x128xf32, #tpu.memory_space<vmem>>, %arg8: memref<16x128xf32, #tpu.memory_space<vmem>>) attributes {dimension_semantics = [#tpu.dimension_semantics<parallel>, #tpu.dimension_semantics<arbitrary>], iteration_bounds = array<i64: 1, 1>, scalar_prefetch = 0 : i64, scratch_operands = 1 : i64, tpu.core_type = #tpu.core_type<tc>, window_params = [{transform_indices = @transform_0, window_bounds = array<i64: 16, 128>}, {transform_indices = @transform_1, window_bounds = array<i64: 128, 128>}, {transform_indices = @transform_2, window_bounds = array<i64: 1, 128>}, {transform_indices = @transform_3, window_bounds = array<i64: 128, 128>}, {pipeline_mode = #tpu.pipeline_mode<synchronous>, transform_indices = @transform_4, window_bounds = array<i64: 1, 128>}, {transform_indices = @transform_5, window_bounds = array<i64: 16, 128>}]} {
    %c0_i32 = arith.constant 0 : i32
    %0 = arith.cmpi eq, %arg1, %c0_i32 : i32
    %1 = arith.extui %0 : i1 to i32
    %c0_i32_0 = arith.constant 0 : i32
    %2 = arith.cmpi ne, %1, %c0_i32_0 : i32
    scf.if %2 {
      %c0_16 = arith.constant 0 : index
      %c0_17 = arith.constant 0 : index
      %19 = vector.load %arg6[%c0_16, %c0_17] : memref<1x128xf32, #tpu.memory_space<vmem>>, vector<1x128xf32>
      %20 = vector.shape_cast %19 : vector<1x128xf32> to vector<1x128xf32>
      %21 = vector.broadcast %20 : vector<1x128xf32> to vector<16x128xf32>
      %c0_18 = arith.constant 0 : index
      %c0_19 = arith.constant 0 : index
      %22 = vector.load %arg8[%c0_18, %c0_19] : memref<16x128xf32, #tpu.memory_space<vmem>>, vector<16x128xf32>
      tpu.vector_store %arg8[%c0_18, %c0_19], %21 {strides = array<i32>} : memref<16x128xf32, #tpu.memory_space<vmem>>, vector<16x128xf32>,
    } else {
    }
    %c0 = arith.constant 0 : index
    %c0_1 = arith.constant 0 : index
    %3 = vector.load %arg2[%c0, %c0_1] : memref<16x128xf32, #tpu.memory_space<vmem>>, vector<16x128xf32>
    %c0_2 = arith.constant 0 : index
    %c0_3 = arith.constant 0 : index
    %4 = vector.load %arg3[%c0_2, %c0_3] : memref<128x128xf32, #tpu.memory_space<vmem>>, vector<128x128xf32>
    %cst = arith.constant dense<0.000000e+00> : vector<16x128xf32>
    %5 = tpu.matmul %3, %4, %cst {dimension_numbers = #tpu.dot_dimension_numbers<[1], [0], [0], [1], [0, 0, 1, 1], [], []>} : vector<16x128xf32>, vector<128x128xf32>, vector<16x128xf32> -> vector<16x128xf32>
    %c0_4 = arith.constant 0 : index
    %c0_5 = arith.constant 0 : index
    %6 = vector.load %arg4[%c0_4, %c0_5] : memref<1x128xf32, #tpu.memory_space<vmem>>, vector<1x128xf32>
    %7 = vector.broadcast %6 : vector<1x128xf32> to vector<16x128xf32>
    %8 = arith.addf %5, %7 : vector<16x128xf32>
    %cst_6 = arith.constant 0.000000e+00 : f32
    %9 = vector.broadcast %cst_6 : f32 to vector<16x128xf32>
    %10 = arith.maximumf %8, %9 : vector<16x128xf32>
    %c0_7 = arith.constant 0 : index
    %c0_8 = arith.constant 0 : index
    %11 = vector.load %arg8[%c0_7, %c0_8] : memref<16x128xf32, #tpu.memory_space<vmem>>, vector<16x128xf32>
    %c0_9 = arith.constant 0 : index
    %c0_10 = arith.constant 0 : index
    %12 = vector.load %arg5[%c0_9, %c0_10] : memref<128x128xf32, #tpu.memory_space<vmem>>, vector<128x128xf32>
    %cst_11 = arith.constant dense<0.000000e+00> : vector<16x128xf32>
    %13 = tpu.matmul %10, %12, %cst_11 {dimension_numbers = #tpu.dot_dimension_numbers<[1], [0], [0], [1], [0, 0, 1, 1], [], []>} : vector<16x128xf32>, vector<128x128xf32>, vector<16x128xf32> -> vector<16x128xf32>
    %14 = arith.addf %11, %13 : vector<16x128xf32>
    %c0_12 = arith.constant 0 : index
    %c0_13 = arith.constant 0 : index
    %15 = vector.load %arg8[%c0_12, %c0_13] : memref<16x128xf32, #tpu.memory_space<vmem>>, vector<16x128xf32>
    tpu.vector_store %arg8[%c0_12, %c0_13], %14 {strides = array<i32>} : memref<16x128xf32, #tpu.memory_space<vmem>>, vector<16x128xf32>,
    %c0_i32_14 = arith.constant 0 : i32
    %16 = arith.cmpi eq, %arg1, %c0_i32_14 : i32
    %17 = arith.extui %16 : i1 to i32
    %c0_i32_15 = arith.constant 0 : i32
    %18 = arith.cmpi ne, %17, %c0_i32_15 : i32
    scf.if %18 {
      %c0_16 = arith.constant 0 : index
      %c0_17 = arith.constant 0 : index
      %19 = vector.load %arg8[%c0_16, %c0_17] : memref<16x128xf32, #tpu.memory_space<vmem>>, vector<16x128xf32>
      %c0_18 = arith.constant 0 : index
      %c0_19 = arith.constant 0 : index
      %20 = vector.load %arg7[%c0_18, %c0_19] : memref<16x128xf32, #tpu.memory_space<vmem>>, vector<16x128xf32>
      tpu.vector_store %arg7[%c0_18, %c0_19], %19 {strides = array<i32>} : memref<16x128xf32, #tpu.memory_space<vmem>>, vector<16x128xf32>,
    } else {
    }
    return
  }
  func.func @transform_0(%arg0: i32, %arg1: i32) -> (i32, i32) {
    %c0_i32 = arith.constant 0 : i32
    %c0_i32_0 = arith.constant 0 : i32
    return %arg0, %c0_i32 : i32, i32
  }
  func.func @transform_1(%arg0: i32, %arg1: i32) -> (i32, i32) {
    %c0_i32 = arith.constant 0 : i32
    %c0_i32_0 = arith.constant 0 : i32
    return %c0_i32, %arg1 : i32, i32
  }
  func.func @transform_2(%arg0: i32, %arg1: i32) -> (i32, i32) {
    %c0_i32 = arith.constant 0 : i32
    %c0_i32_0 = arith.constant 0 : i32
    return %c0_i32, %arg1 : i32, i32
  }
  func.func @transform_3(%arg0: i32, %arg1: i32) -> (i32, i32) {
    %c0_i32 = arith.constant 0 : i32
    %c0_i32_0 = arith.constant 0 : i32
    return %arg1, %c0_i32 : i32, i32
  }
  func.func @transform_4(%arg0: i32, %arg1: i32) -> (i32, i32) {
    %c0_i32 = arith.constant 0 : i32
    %c0_i32_0 = arith.constant 0 : i32
    %c0_i32_1 = arith.constant 0 : i32
    return %c0_i32, %c0_i32_0 : i32, i32
  }
  func.func @transform_5(%arg0: i32, %arg1: i32) -> (i32, i32) {
    %c0_i32 = arith.constant 0 : i32
    %c0_i32_0 = arith.constant 0 : i32
    return %arg0, %c0_i32 : i32, i32
  }
}

</mosaic_0001>

<bundles_post_ra>
// kernel: feed_forward_network.1
= control target key start
LH: loop header
LB: loop body
LE: loop exit
PB: predicated region body
PF: predicated region fallthrough
CT: control target
= control target key end

     0   :  { %s311_s1 = inlined_call_operand.vmem [shape: f32[128,128], index: 1, kind: input, shape index: {}]   ;;  %s312_s3 = inlined_call_operand.vmem [shape: f32[128,128], index: 3, kind: input, shape index: {}]   ;;  %s313_s2 = inlined_call_operand.vmem [shape: f32[1,128], index: 2, kind: input, shape index: {}]   ;;  %s314_s0 = inlined_call_operand.vmem [shape: f32[16,128], index: 0, kind: input, shape index: {}]   ;;  %s315_s4 = inlined_call_operand.vmem [shape: f32[1,128], index: 4, kind: input, shape index: {}]   ;;  %s316_s5 = inlined_call_operand.vmem [shape: f32[16,128], index: 5, kind: output, shape index: {}]  }
   0x1   :  { %v47_v0 = vld [vmem:[%s311_s1 + $0x78] sm:$0xff]  ;;  %v46_v1 = vld [vmem:[%s311_s1 + $0x70] sm:$0xff]  ;;  %v45_v2 = vld [vmem:[%s311_s1 + $0x68] sm:$0xff] }
   0x2   :  { %133 = vmatpush.msra.mxu2 %v47_v0  ;;  %52 = vmatpush.msra.mxu0 %v47_v0  ;;  %v44_v3 = vld [vmem:[%s311_s1 + $0x60] sm:$0xff]  ;;  %v43_v4 = vld [vmem:[%s311_s1 + $0x58] sm:$0xff]  ;;  %v93_v6 = vld [vmem:[%s312_s3 + $0x70] sm:$0xff] }
   0x3   :  { %v94_v5 = vld [vmem:[%s312_s3 + $0x78] sm:$0xff]  ;;  %v42_v7 = vld [vmem:[%s311_s1 + $0x50] sm:$0xff]  ;;  %v92_v8 = vld [vmem:[%s312_s3 + $0x68] sm:$0xff] }
   0x4   :  { %134 = vmatpush.msra.mxu2 %v46_v1  ;;  %53 = vmatpush.msra.mxu0 %v46_v1  ;;  %v41_v9 = vld [vmem:[%s311_s1 + $0x48] sm:$0xff]  ;;  %v91_v10 = vld [vmem:[%s312_s3 + $0x60] sm:$0xff]  ;;  %v90_v12 = vld [vmem:[%s312_s3 + $0x58] sm:$0xff] }
   0x5   :  { %149 = vmatpush.msra.mxu3 %v94_v5  ;;  %95 = vmatpush.msra.mxu1 %v94_v5  ;;  %v40_v11 = vld [vmem:[%s311_s1 + $0x40] sm:$0xff]  ;;  %v39_v13 = vld [vmem:[%s311_s1 + $0x38] sm:$0xff]  ;;  %v89_v14 = vld [vmem:[%s312_s3 + $0x50] sm:$0xff] }
   0x6   :  { %135 = vmatpush.msra.mxu2 %v45_v2  ;;  %54 = vmatpush.msra.mxu0 %v45_v2  ;;  %v38_v15 = vld [vmem:[%s311_s1 + $0x30] sm:$0xff]  ;;  %v88_v16 = vld [vmem:[%s312_s3 + $0x48] sm:$0xff]  ;;  %v87_v18 = vld [vmem:[%s312_s3 + $0x40] sm:$0xff] }
   0x7   :  { %150 = vmatpush.msra.mxu3 %v93_v6  ;;  %96 = vmatpush.msra.mxu1 %v93_v6  ;;  %v37_v17 = vld [vmem:[%s311_s1 + $0x28] sm:$0xff]  ;;  %v36_v19 = vld [vmem:[%s311_s1 + $0x20] sm:$0xff]  ;;  %v86_v20 = vld [vmem:[%s312_s3 + $0x38] sm:$0xff] }
   0x8   :  { %136 = vmatpush.msra.mxu2 %v44_v3  ;;  %55 = vmatpush.msra.mxu0 %v44_v3  ;;  %v35_v21 = vld [vmem:[%s311_s1 + $0x18] sm:$0xff]  ;;  %v85_v22 = vld [vmem:[%s312_s3 + $0x30] sm:$0xff]  ;;  %v84_v24 = vld [vmem:[%s312_s3 + $0x28] sm:$0xff] }
   0x9   :  { %151 = vmatpush.msra.mxu3 %v92_v8  ;;  %97 = vmatpush.msra.mxu1 %v92_v8  ;;  %v34_v23 = vld [vmem:[%s311_s1 + $0x10] sm:$0xff]  ;;  %v33_v25 = vld [vmem:[%s311_s1 + $0x8] sm:$0xff]  ;;  %v83_v26 = vld [vmem:[%s312_s3 + $0x20] sm:$0xff] }
   0xa   :  { %137 = vmatpush.msra.mxu2 %v43_v4  ;;  %56 = vmatpush.msra.mxu0 %v43_v4  ;;  %v32_v27 = vld [vmem:[%s311_s1] sm:$0xff]  ;;  %v31_v28 = vld [vmem:[%s314_s0 + $0x8] sm:$0xff]  ;;  %v82_v30 = vld [vmem:[%s312_s3 + $0x18] sm:$0xff] }
   0xb   :  { %152 = vmatpush.msra.mxu3 %v91_v10  ;;  %98 = vmatpush.msra.mxu1 %v91_v10  ;;  %v30_v29 = vld [vmem:[%s314_s0] sm:$0xff]  ;;  %v81_v31 = vld [vmem:[%s312_s3 + $0x10] sm:$0xff]  ;;  %v80_v32 = vld [vmem:[%s312_s3 + $0x8] sm:$0xff] }
   0xc   :  { %138 = vmatpush.msra.mxu2 %v42_v7  ;;  %57 = vmatpush.msra.mxu0 %v42_v7  ;;  %v79_v33 = vld [vmem:[%s312_s3] sm:$0xff] }
   0xd   :  { %153 = vmatpush.msra.mxu3 %v90_v12  ;;  %99 = vmatpush.msra.mxu1 %v90_v12  ;;  %v165_v34 = vld [vmem:[%s313_s2] ss:$0 sm:$0xff] }
   0xe   :  { %139 = vmatpush.msra.mxu2 %v41_v9  ;;  %58 = vmatpush.msra.mxu0 %v41_v9  ;;  %v166_v41 = vld [vmem:[%s315_s4] ss:$0 sm:$0xff] }
   0xf   :  { %154 = vmatpush.msra.mxu3 %v89_v14  ;;  %100 = vmatpush.msra.mxu1 %v89_v14 }
  0x10   :  { %140 = vmatpush.msra.mxu2 %v40_v11  ;;  %59 = vmatpush.msra.mxu0 %v40_v11 }
  0x11   :  { %155 = vmatpush.msra.mxu3 %v88_v16  ;;  %101 = vmatpush.msra.mxu1 %v88_v16 }
  0x12   :  { %141 = vmatpush.msra.mxu2 %v39_v13  ;;  %60 = vmatpush.msra.mxu0 %v39_v13 }
  0x13   :  { %156 = vmatpush.msra.mxu3 %v87_v18  ;;  %102 = vmatpush.msra.mxu1 %v87_v18 }
  0x14   :  { %142 = vmatpush.msra.mxu2 %v38_v15  ;;  %61 = vmatpush.msra.mxu0 %v38_v15 }
  0x15   :  { %157 = vmatpush.msra.mxu3 %v86_v20  ;;  %103 = vmatpush.msra.mxu1 %v86_v20 }
  0x16   :  { %143 = vmatpush.msra.mxu2 %v37_v17  ;;  %62 = vmatpush.msra.mxu0 %v37_v17 }
  0x17   :  { %158 = vmatpush.msra.mxu3 %v85_v22  ;;  %104 = vmatpush.msra.mxu1 %v85_v22 }
  0x18   :  { %144 = vmatpush.msra.mxu2 %v36_v19  ;;  %63 = vmatpush.msra.mxu0 %v36_v19 }
  0x19   :  { %159 = vmatpush.msra.mxu3 %v84_v24  ;;  %105 = vmatpush.msra.mxu1 %v84_v24 }
  0x1a   :  { %145 = vmatpush.msra.mxu2 %v35_v21  ;;  %64 = vmatpush.msra.mxu0 %v35_v21 }
  0x1b   :  { %160 = vmatpush.msra.mxu3 %v83_v26  ;;  %106 = vmatpush.msra.mxu1 %v83_v26 }
  0x1c   :  { %146 = vmatpush.msra.mxu2 %v34_v23  ;;  %65 = vmatpush.msra.mxu0 %v34_v23 }
  0x1d   :  { %161 = vmatpush.msra.mxu3 %v82_v30  ;;  %107 = vmatpush.msra.mxu1 %v82_v30 }
  0x1e   :  { %147 = vmatpush.msra.mxu2 %v33_v25  ;;  %66 = vmatpush.msra.mxu0 %v33_v25 }
  0x1f   :  { %162 = vmatpush.msra.mxu3 %v81_v31  ;;  %108 = vmatpush.msra.mxu1 %v81_v31 }
  0x20   :  { %148 = vmatpush.msra.mxu2 %v32_v27  ;;  %67 = vmatpush.msra.mxu0 %v32_v27 }
  0x21   :  { %71 = vmatmul.f32.vlgmr.msra.gmra.mxu2 %v31_v28  ;;  %68 = vmatmul.f32.vlgmr.msra.gmra.mxu0 %v30_v29 }
  0x22   :  { %163 = vmatpush.msra.mxu3 %v80_v32  ;;  %109 = vmatpush.msra.mxu1 %v80_v32 }
  0x24   :  { %164 = vmatpush.msra.mxu3 %v79_v33  ;;  %110 = vmatpush.msra.mxu1 %v79_v33 }
  0x9e   :  { %v69_v35 = vpop.f32.mrf.mxu0 }
  0x9f   :  { %v70_v36 = vadd.f32 %v165_v34, %v69_v35 }
  0xa1   :  { %v75_v37 = vmax.f32 %v70_v36, 0.0 }
  0xa3   :  { %111 = vmatmul.f32.vlgmr.msra.gmra.mxu1 %v75_v37 }
  0xa4   :  { %v72_v38 = vpop.f32.mrf.mxu2 }
  0xa5   :  { %v73_v39 = vadd.f32 %v165_v34, %v72_v38 }
  0xa7   :  { %v76_v40 = vmax.f32 %v73_v39, 0.0 }
  0xa9   :  { %114 = vmatmul.f32.vlgmr.msra.gmra.mxu3 %v76_v40 }
 0x120   :  { %v112_v42 = vpop.f32.mrf.mxu1 }
 0x121   :  { %v118_v43 = vadd.f32 %v166_v41, %v112_v42 }
 0x123   :  { %127 = vst [vmem:[%s316_s5] sm:$0xff] %v118_v43 }
 0x12c   :  { %v115_v44 = vpop.f32.mrf.mxu3 }
 0x12d   :  { %v119_v45 = vadd.f32 %v166_v41, %v115_v44 }
 0x12f   :  { %128 = vst [vmem:[%s316_s5 + $0x8] sm:$0xff] %v119_v45 }

</bundles_post_ra>
